<compile_context>
chip_gen: v5e
topology: v5e:2x2
jax: 0.10.0
libtpu: 0.0.40
codegen_flags: <defaults>
</compile_context>

<pallas_src>
import jax
import jax.numpy as jnp
from jax import lax
from jax.experimental import pallas as pl
from jax.experimental.pallas import tpu as pltpu


def _round_up(x, m):
    return (x + m - 1) // m * m


def _pick_hidden_chunk(H, th):
    """Largest lane-aligned chunk <= th that divides H (fallback: whole H)."""
    for c in (th, 2048, 1024, 512, 256, 128):
        if c <= H and H % c == 0:
            return c
    return H  # tiny / odd hidden sizes: single chunk, full-dim block (legal)


def _mlp_kernel(x_ref, wgu_ref, wd_ref, o_ref, acc_ref):
    """One (row-tile i, hidden-chunk h) grid step.

    x_ref:   (tm, E)       activations (compute dtype)
    wgu_ref: (2, th, E)    stacked [gate; up] weights, nn.Linear (out, in) layout
    wd_ref:  (E, th)       down_proj weight chunk, nn.Linear (out, in) layout
    o_ref:   (tm, E)       output tile (written on the last hidden chunk)
    acc_ref: (tm, E) f32   accumulator over hidden chunks (scratch, persistent)
    """
    h = pl.program_id(1)

    @pl.when(h == 0)
    def _():
        acc_ref[...] = jnp.zeros_like(acc_ref)

    x = x_ref[...]
    dn = (((1,), (1,)), ((), ()))  # contract last dim of both operands (x @ W.T)

    # gate / up projections for this hidden chunk; f32 accumulation on the MXU.
    # TODO(synk): could fuse into a single (tm,E)x(E,2*th) matmul via an
    # in-kernel reshape of the stacked weight tile (few-% MXU setup win).
    gate = lax.dot_general(x, wgu_ref[0], dn, preferred_element_type=jnp.float32)
    up = lax.dot_general(x, wgu_ref[1], dn, preferred_element_type=jnp.float32)

    # The reference module is SiLU(up * gate) (not silu(gate) * up).
    hidden = up * gate
    hidden = hidden * jax.nn.sigmoid(hidden)  # SiLU in f32

    # Partial down projection for this chunk, accumulated in f32.
    acc_ref[...] += lax.dot_general(
        hidden.astype(wd_ref.dtype), wd_ref[...], dn,
        preferred_element_type=jnp.float32)

    @pl.when(h == pl.num_programs(1) - 1)
    def _():
        o_ref[...] = acc_ref[...].astype(o_ref.dtype)


def _vmem_limit_bytes(tm, th, E, w_itemsize, out_itemsize):
    dbl = 2  # default double buffering per pipelined input / output
    total = (dbl * tm * E * w_itemsize          # x tiles
             + dbl * 2 * th * E * w_itemsize    # stacked gate/up weight tiles
             + dbl * E * th * w_itemsize        # down-proj weight tiles
             + dbl * tm * E * out_itemsize      # output tiles
             + tm * E * 4)                      # f32 accumulator
    # 25% headroom for compiler-internal scratch; stay within v7x's 64 MiB/TC.
    return int(min(max(total * 1.25, 32 * 1024 * 1024), 64 * 1024 * 1024))


def _mlp_pallas(x2d, w_gu, wd, *, tm, th, out_dtype):
    M, E = x2d.shape
    H = w_gu.shape[1]
    assert M % tm == 0 and H % th == 0
    grid = (M // tm, H // th)  # reduction (H) axis last, marked "arbitrary"
    return pl.pallas_call(
        _mlp_kernel,
        out_shape=jax.ShapeDtypeStruct((M, E), out_dtype),
        grid_spec=pltpu.PrefetchScalarGridSpec(
            num_scalar_prefetch=0,
            grid=grid,
            in_specs=[
                pl.BlockSpec((tm, E), lambda i, h: (i, 0)),        # x rows
                pl.BlockSpec((2, th, E), lambda i, h: (0, h, 0)),  # [Wg; Wu]
                pl.BlockSpec((E, th), lambda i, h: (0, h)),        # Wd chunk
            ],
            out_specs=pl.BlockSpec((tm, E), lambda i, h: (i, 0)),
            scratch_shapes=[pltpu.VMEM((tm, E), jnp.float32)],
        ),
        compiler_params=pltpu.CompilerParams(
            dimension_semantics=("parallel", "arbitrary"),
            vmem_limit_bytes=_vmem_limit_bytes(
                tm, th, E, x2d.dtype.itemsize, jnp.dtype(out_dtype).itemsize),
        ),
    )(x2d, w_gu, wd)


def prepare_mlp_params(wg, wu, wd, dtype=None):
    """Do ONCE at model-load time (not per forward call).

    wg, wu: (hidden, n_embed); wd: (n_embed, hidden) — torch nn.Linear.weight
    layouts, kept as-is (no transposes are materialized in HBM, ever).
    `dtype=jnp.bfloat16` halves weight HBM traffic / VMEM footprint and doubles
    MXU throughput; accumulation inside the kernel stays f32.
    """
    if dtype is not None:
        wg, wu, wd = (w.astype(dtype) for w in (wg, wu, wd))
    w_gu = jnp.stack([wg, wu], axis=0)  # (2, H, E): gate/up stream as one tensor
    return w_gu, wd


def mlp_forward(x, params, *, tm=256, th=512):
    """x: (..., n_embed); params from prepare_mlp_params."""
    w_gu, wd = params
    E = x.shape[-1]
    H = w_gu.shape[1]
    assert w_gu.shape == (2, H, E) and wd.shape == (E, H)

    x2d = x.reshape(-1, E).astype(w_gu.dtype)  # compute dtype = weight dtype
    M = x2d.shape[0]

    # Row tile: as large as requested; pad ragged token counts (zero rows are
    # harmless: they produce zero outputs and are sliced off).
    tm_eff = min(tm, _round_up(M, 8))
    M_pad = _round_up(M, tm_eff)
    if M_pad != M:
        x2d = jnp.pad(x2d, ((0, M_pad - M), (0, 0)))

    th_eff = _pick_hidden_chunk(H, th)

    out = _mlp_pallas(x2d, w_gu, wd, tm=tm_eff, th=th_eff, out_dtype=x.dtype)
    if M_pad != M:
        out = out[:M]
    return out.reshape(x.shape)


def mlp_reference(x, wg, wu, wd):
    gate = x @ wg.T
    up = x @ wu.T
    h = up * gate
    h = h * jax.nn.sigmoid(h)
    return h @ wd.T


if __name__ == "__main__":
    key = jax.random.PRNGKey(0)
    kx, kg, ku, kd = jax.random.split(key, 4)

    # Config 1: lane-aligned small shapes; th=128 forces multiple hidden chunks
    # so the reduction/accumulator path is exercised.
    batch, seq, n_embed, hidden = 2, 8, 128, 256
    x = jax.random.normal(kx, (batch, seq, n_embed), dtype=jnp.float32)
    # nn.Linear weight shapes: (out_features, in_features), bias=False
    wg = jax.random.normal(kg, (hidden, n_embed), dtype=jnp.float32) * 0.05
    wu = jax.random.normal(ku, (hidden, n_embed), dtype=jnp.float32) * 0.05
    wd = jax.random.normal(kd, (n_embed, hidden), dtype=jnp.float32) * 0.05

    ref = mlp_reference(x, wg, wu, wd)

    # f32 path (tight check).
    params_f32 = prepare_mlp_params(wg, wu, wd)
    out = jax.block_until_ready(mlp_forward(x, params_f32, tm=256, th=128))
    assert out.shape == x.shape
    assert jnp.allclose(out, ref, atol=1e-4, rtol=1e-4), "f32 mismatch vs reference"

    # bf16 weights/activations with f32 accumulation (production path).
    params_bf16 = prepare_mlp_params(wg, wu, wd, dtype=jnp.bfloat16)
    out_bf16 = jax.block_until_ready(mlp_forward(x, params_bf16, tm=256, th=128))
    assert out_bf16.dtype == x.dtype
    assert jnp.allclose(out_bf16, ref, atol=3e-2, rtol=3e-2), "bf16 mismatch"

    # Config 2: toy / ragged shapes (exercises row padding + full-dim blocks).
    b2, s2, e2, h2 = 2, 5, 32, 64
    x2 = jax.random.normal(kx, (b2, s2, e2), dtype=jnp.float32)
    wg2 = jax.random.normal(kg, (h2, e2), dtype=jnp.float32) * 0.05
    wu2 = jax.random.normal(ku, (h2, e2), dtype=jnp.float32) * 0.05
    wd2 = jax.random.normal(kd, (e2, h2), dtype=jnp.float32) * 0.05
    ref2 = mlp_reference(x2, wg2, wu2, wd2)
    out2 = jax.block_until_ready(
        mlp_forward(x2, prepare_mlp_params(wg2, wu2, wd2)))
    assert out2.shape == x2.shape
    assert jnp.allclose(out2, ref2, atol=1e-4, rtol=1e-4), "ragged mismatch"

    print("KERNEL_OK")
</pallas_src>

<mosaic_0001>
module attributes {stable_mosaic.version = 11 : i64} {
  func.func @_mlp_kernel(%arg0: i32, %arg1: i32, %arg2: memref<16x128xf32, #tpu.memory_space<vmem>>, %arg3: memref<2x128x128xf32, #tpu.memory_space<vmem>>, %arg4: memref<128x128xf32, #tpu.memory_space<vmem>>, %arg5: memref<16x128xf32, #tpu.memory_space<vmem>>, %arg6: memref<16x128xf32, #tpu.memory_space<vmem>>) attributes {dimension_semantics = [#tpu.dimension_semantics<parallel>, #tpu.dimension_semantics<arbitrary>], iteration_bounds = array<i64: 1, 2>, scalar_prefetch = 0 : i64, scratch_operands = 1 : i64, tpu.core_type = #tpu.core_type<tc>, window_params = [{transform_indices = @transform_0, window_bounds = array<i64: 16, 128>}, {transform_indices = @transform_1, window_bounds = array<i64: 2, 128, 128>}, {transform_indices = @transform_2, window_bounds = array<i64: 128, 128>}, {transform_indices = @transform_3, window_bounds = array<i64: 16, 128>}]} {
    %c0_i32 = arith.constant 0 : i32
    %0 = arith.cmpi eq, %arg1, %c0_i32 : i32
    %1 = arith.extui %0 : i1 to i32
    %c0_i32_0 = arith.constant 0 : i32
    %2 = arith.cmpi ne, %1, %c0_i32_0 : i32
    scf.if %2 {
      %cst_17 = arith.constant 0.000000e+00 : f32
      %25 = vector.broadcast %cst_17 : f32 to vector<16x128xf32>
      %c0_18 = arith.constant 0 : index
      %c0_19 = arith.constant 0 : index
      %26 = vector.load %arg6[%c0_18, %c0_19] : memref<16x128xf32, #tpu.memory_space<vmem>>, vector<16x128xf32>
      tpu.vector_store %arg6[%c0_18, %c0_19], %25 {strides = array<i32>} : memref<16x128xf32, #tpu.memory_space<vmem>>, vector<16x128xf32>,
    } else {
    }
    %c0 = arith.constant 0 : index
    %c0_1 = arith.constant 0 : index
    %3 = vector.load %arg2[%c0, %c0_1] : memref<16x128xf32, #tpu.memory_space<vmem>>, vector<16x128xf32>
    %c0_2 = arith.constant 0 : index
    %c0_3 = arith.constant 0 : index
    %c0_4 = arith.constant 0 : index
    %4 = vector.load %arg3[%c0_2, %c0_3, %c0_4] : memref<2x128x128xf32, #tpu.memory_space<vmem>>, vector<1x128x128xf32>
    %5 = vector.shape_cast %4 : vector<1x128x128xf32> to vector<128x128xf32>
    %cst = arith.constant dense<0.000000e+00> : vector<16x128xf32>
    %6 = tpu.matmul %3, %5, %cst {dimension_numbers = #tpu.dot_dimension_numbers<[1], [1], [0], [0], [0, 0, 1, 0], [], []>} : vector<16x128xf32>, vector<128x128xf32>, vector<16x128xf32> -> vector<16x128xf32>
    %c1 = arith.constant 1 : index
    %c0_5 = arith.constant 0 : index
    %c0_6 = arith.constant 0 : index
    %7 = vector.load %arg3[%c1, %c0_5, %c0_6] : memref<2x128x128xf32, #tpu.memory_space<vmem>>, vector<1x128x128xf32>
    %8 = vector.shape_cast %7 : vector<1x128x128xf32> to vector<128x128xf32>
    %cst_7 = arith.constant dense<0.000000e+00> : vector<16x128xf32>
    %9 = tpu.matmul %3, %8, %cst_7 {dimension_numbers = #tpu.dot_dimension_numbers<[1], [1], [0], [0], [0, 0, 1, 0], [], []>} : vector<16x128xf32>, vector<128x128xf32>, vector<16x128xf32> -> vector<16x128xf32>
    %10 = arith.mulf %9, %6 : vector<16x128xf32>
    %11 = arith.negf %10 : vector<16x128xf32>
    %12 = math.exp %11 : vector<16x128xf32>
    %cst_8 = arith.constant 1.000000e+00 : f32
    %13 = vector.broadcast %cst_8 : f32 to vector<16x128xf32>
    %14 = arith.addf %13, %12 : vector<16x128xf32>
    %15 = arith.divf %13, %14 : vector<16x128xf32>
    %16 = arith.mulf %10, %15 : vector<16x128xf32>
    %c0_9 = arith.constant 0 : index
    %c0_10 = arith.constant 0 : index
    %17 = vector.load %arg6[%c0_9, %c0_10] : memref<16x128xf32, #tpu.memory_space<vmem>>, vector<16x128xf32>
    %c0_11 = arith.constant 0 : index
    %c0_12 = arith.constant 0 : index
    %18 = vector.load %arg4[%c0_11, %c0_12] : memref<128x128xf32, #tpu.memory_space<vmem>>, vector<128x128xf32>
    %cst_13 = arith.constant dense<0.000000e+00> : vector<16x128xf32>
    %19 = tpu.matmul %16, %18, %cst_13 {dimension_numbers = #tpu.dot_dimension_numbers<[1], [1], [0], [0], [0, 0, 1, 0], [], []>} : vector<16x128xf32>, vector<128x128xf32>, vector<16x128xf32> -> vector<16x128xf32>
    %20 = arith.addf %17, %19 : vector<16x128xf32>
    %c0_14 = arith.constant 0 : index
    %c0_15 = arith.constant 0 : index
    %21 = vector.load %arg6[%c0_14, %c0_15] : memref<16x128xf32, #tpu.memory_space<vmem>>, vector<16x128xf32>
    tpu.vector_store %arg6[%c0_14, %c0_15], %20 {strides = array<i32>} : memref<16x128xf32, #tpu.memory_space<vmem>>, vector<16x128xf32>,
    %c1_i32 = arith.constant 1 : i32
    %22 = arith.cmpi eq, %arg1, %c1_i32 : i32
    %23 = arith.extui %22 : i1 to i32
    %c0_i32_16 = arith.constant 0 : i32
    %24 = arith.cmpi ne, %23, %c0_i32_16 : i32
    scf.if %24 {
      %c0_17 = arith.constant 0 : index
      %c0_18 = arith.constant 0 : index
      %25 = vector.load %arg6[%c0_17, %c0_18] : memref<16x128xf32, #tpu.memory_space<vmem>>, vector<16x128xf32>
      %c0_19 = arith.constant 0 : index
      %c0_20 = arith.constant 0 : index
      %26 = vector.load %arg5[%c0_19, %c0_20] : memref<16x128xf32, #tpu.memory_space<vmem>>, vector<16x128xf32>
      tpu.vector_store %arg5[%c0_19, %c0_20], %25 {strides = array<i32>} : memref<16x128xf32, #tpu.memory_space<vmem>>, vector<16x128xf32>,
    } else {
    }
    return
  }
  func.func @transform_0(%arg0: i32, %arg1: i32) -> (i32, i32) {
    %c0_i32 = arith.constant 0 : i32
    %c0_i32_0 = arith.constant 0 : i32
    return %arg0, %c0_i32 : i32, i32
  }
  func.func @transform_1(%arg0: i32, %arg1: i32) -> (i32, i32, i32) {
    %c0_i32 = arith.constant 0 : i32
    %c0_i32_0 = arith.constant 0 : i32
    %c0_i32_1 = arith.constant 0 : i32
    return %c0_i32, %arg1, %c0_i32_0 : i32, i32, i32
  }
  func.func @transform_2(%arg0: i32, %arg1: i32) -> (i32, i32) {
    %c0_i32 = arith.constant 0 : i32
    %c0_i32_0 = arith.constant 0 : i32
    return %c0_i32, %arg1 : i32, i32
  }
  func.func @transform_3(%arg0: i32, %arg1: i32) -> (i32, i32) {
    %c0_i32 = arith.constant 0 : i32
    %c0_i32_0 = arith.constant 0 : i32
    return %arg0, %c0_i32 : i32, i32
  }
}

</mosaic_0001>

<bundles_post_ra>
// kernel: tpu_custom_call.1
= control target key start
LH: loop header
LB: loop body
LE: loop exit
PB: predicated region body
PF: predicated region fallthrough
CT: control target
= control target key end

     0   :  { %s1104_s0 = inlined_call_operand.hbm [shape: f32[16,128], index: 0, kind: input, shape index: {}]   ;;  %s1105_s1 = inlined_call_operand.hbm [shape: f32[2,256,128], index: 1, kind: input, shape index: {}]   ;;  %s1106_s2 = inlined_call_operand.hbm [shape: f32[128,256], index: 2, kind: input, shape index: {}]   ;;  %s1107_s3 = inlined_call_operand.hbm [shape: f32[16,128], index: 3, kind: output, shape index: {}]  }
   0x1   :  { %1108 = sst [smem:[#allocation16_spill]] %s1104_s0 }
   0x2   :  { %8 = vsyncpa [#allocation4], 0 }
   0x3   :  { %9 = vsyncpa [#allocation7], 0 }
   0x4   :  { %11 = vsyncpa [#allocation7 + $0x1], 0 }
   0x5   :  { %12 = vsyncpa [#allocation5], 0  ;;  %s915_s12 = smov 0   ;;  %s917_s13 = smov 0  }
   0x6   :  { %s919_s14 = smov 0   ;;  %s921_s15 = smov 0  }
   0x7   :  { %s923_s16 = smov 0   ;;  %s925_s17 = smov 0  }
   0x8 LB: > { %s944_s18 = sadd.s32 4294967295, %s877_s17   ;;  %s27_s19 = sadd.s32 1, %s873_s16  ;;  %s877_s17 = sphi %s925_s17, %s18_s17   ;;  %s873_s16 = sphi %s923_s16, %s1117_s16   ;;  %s869_s15 = sphi %s921_s15, %s1116_s15   ;;  %s865_s14 = sphi %s919_s14, %s1115_s14   ;;  %s861_s13 = sphi %s917_s13, %s1114_s13   ;;  %s857_s12 = sphi %s915_s12, %s1113_s12  }
   0x9   : > { %p28_p0 = scmp.ge.s32.totalorder %s27_s19, 2  ;;  %s63_s20 = sadd.s32 1, %s865_s14 }
   0xa   : > { %p70_p1 = scmp.ne.s32.totalorder %s865_s14, %s861_s13  ;;  %p71_p2 = scmp.eq.s32.totalorder %s877_s17, 0 }
   0xb   : > { %s1119_s19 = smov (%p28_p0, %s27_s19), 0  ;;  %p76_p4 = scmp.ne.s32.totalorder %s861_s13, %s857_s12 }
   0xc   : > { %p953_p3 = por %p71_p2, %p70_p1  ;;  %s60_s22 = ssub.s32 %s873_s16, %s1119_s19 }
   0xd   : > { %p77_p5 = scmp.eq.s32.totalorder %s944_s18, 0  ;;  %p61_p6 = scmp.eq.s32.totalorder %s60_s22, 0 }
   0xe   : > { %p579_p7 = scmp.ge.s32.totalorder %s877_s17, 1  ;;  %p139_p9 = scmp.lt.s32.totalorder %s877_s17, 3 }
   0xf   : > { %p964_p8 = por %p77_p5, %p76_p4  ;;  %s1112_s0 = sld [smem:[#allocation16_spill]] }
  0x10   : > { %s970_s24 = scalar_select %p61_p6, %s865_s14, %s63_s20  }
  0x11   : > { %p972_p10 = pnand %p579_p7, %p139_p9  ;;  %s879_s29 = smov [#allocation3]  }
  0x12   : > { %s155_s30 = sshll.u32 %s879_s29, 4  ;;  %s880_s4 = smov 128   ;;  %s156_s30 = int_to_ptr.vmem [resolvable:$true] %s155_s30 }
  0x13   : > { %p653_p11 = pneg %p972_p10  ;;  %s881_s5 = smov 8  }
  0x14   : > { %p581_p13 = scmp.ge.s32.totalorder %s877_s17, 2 }
  0x15   : > { %s153_s28 = sshll.u32 %s1112_s0, 4  ;;  %p654_p12 = pnand %p653_p11, %p77_p5  ;;  %s154_s28 = int_to_ptr.hbm [resolvable:$true] %s153_s28 }
  0x16   : > { %165 = sbr.rel (%p581_p13) target bundleno = 47 (0x2f), region = 20 }
  0x17   : > { %656 = dma.hbm_to_vmem [thread:$0]  (!%p654_p12), %s154_s28, 256, %s156_s30, [#allocation4], %s880_s4, %s880_s4, %s881_s5  }
  0x1b   : > { %s169_s6 = sand.u32 1, %s877_s17   ;;  %s171_s7 = sand.u32 1, %s865_s14  }
  0x1c   : > { %s582_s8 = sshll.u32 %s171_s7, 8  ;;  %s617_s9 = sshll.u32 %s873_s16, 7 }
  0x1d   : > { %s178_s12 = scalar_lea.hbm %s1105_s1, %s617_s9  ;;  %s173_s20 = scalar_lea.vmem [#allocation6], %s582_s8 }
  0x1e   : > { %s193_s22 = sshll.u32 %s173_s20, 4  ;;  %s191_s27 = sshll.u32 %s178_s12, 4  ;;  %s194_s22 = int_to_ptr.vmem [resolvable:$true] %s193_s22  ;;  %s192_s27 = int_to_ptr.hbm [resolvable:$true] %s191_s27 }
  0x1f   : > { %s636_s26 = scalar_select %p953_p3, [#allocation0], [#allocation12] }
  0x20   : > { %s882_s29 = smov 4096   ;;  %s883_s30 = smov 2048  }
  0x21   : > { %s183_s28 = sld [smem:[%s636_s26]]   ;;  %s884_s4 = smov 16  }
  0x22   : > { %637 = sst [smem:[#allocation11]] (%p953_p3), %s882_s29  ;;  %s885_s5 = smov 128  }
  0x23   : > { %638 = sst [smem:[#allocation11 + $0x1]] (%p953_p3), %s883_s30  ;;  %s886_s10 = smov 8  }
  0x24   : > { %639 = sst [smem:[#allocation11 + $0x2]] (%p953_p3), %s884_s4  ;;  %s170_s11 = scalar_lea.sflag [#allocation7], %s169_s6 }
  0x25   : > { %640 = sst [smem:[#allocation11 + $0x3]] (%p953_p3), %s885_s5  ;;  %s887_s12 = smov [#allocation10]  }
  0x26   : > { %641 = sst [smem:[#allocation11 + $0x4]] (%p953_p3), %s885_s5  ;;  %s587_s20 = sshll.u32 %s171_s7, 7 }
  0x27   : > { %s585_s8 = sshll.u32 %s183_s28, 26  ;;  %642 = sst [smem:[#allocation11 + $0x5]] (%p953_p3), %s886_s10 }
  0x28   : > { %s586_s9 = sadd.s32 134217728, %s585_s8  ;;  %s588_s26 = sshll.u32 %s873_s16, 3 }
  0x29   : > { %643 = dma.general (%p953_p3), %s192_s27, 4096, %s194_s22, %s170_s11, %s887_s12, [#allocation11], %s586_s9, 0  }
  0x2a   : > { %s224_s28 = scalar_lea.hbm %s1106_s2, %s588_s26  ;;  %s220_s5 = scalar_lea.vmem [#allocation8], %s587_s20 }
  0x2b   : > { %s225_s4 = sshll.u32 %s224_s28, 4  ;;  %s227_s8 = sshll.u32 %s220_s5, 4  ;;  %s226_s4 = int_to_ptr.hbm [resolvable:$true] %s225_s4  ;;  %s228_s8 = int_to_ptr.vmem [resolvable:$true] %s227_s8 }
  0x2c   : > { %s888_s10 = smov 256   ;;  %s889_s6 = smov 128  }
  0x2d   : > { %s890_s0 = smov 8  }
  0x2e   : > { %644 = dma.hbm_to_vmem [thread:$0]  (%p953_p3), %s226_s4, 2048, %s228_s8, %s170_s11, %s888_s10, %s889_s6, %s890_s0  }
  0x2f PF: > { %239 = sbr.rel (%p972_p10) target bundleno = 447 (0x1bf), region = 32 }
  0x34   : > { %844 = dma.done.wait (%p77_p5), [#allocation4], 256  }
  0x35   : > { %846 = vsyncadd (%p77_p5), [#allocation4], 4294967040  ;;  %s246_s7 = sand.u32 1, %s944_s18   ;;  %s248_s22 = sand.u32 1, %s861_s13  }
  0x36   : > { %s591_s27 = sshll.u32 %s248_s22, 8  ;;  %s247_s9 = scalar_lea.sflag [#allocation7], %s246_s7 }
  0x37   : > { %s1024_s12 = scalar_lea.vmem [#allocation6], %s591_s27 }
  0x38   : > { %848 = dma.done.wait (%p964_p8), %s247_s9, 6144  }
  0x39   : > { %850 = vsyncadd (%p964_p8), %s247_s9, 4294961152  ;;  %s592_s0 = sshll.u32 %s248_s22, 7  ;;  %p593_p0 = scmp.ne.s32.totalorder %s869_s15, 0 }
  0x3a   : > { %s1030_s21 = scalar_lea.vmem [#allocation8], %s592_s0 }
  0x3b   : > { %290 = sbr.rel (%p593_p0) target bundleno = 67 (0x43), region = 48 }
  0x40   : > { %v891_v0 = vmov 0.0  }
  0x41   : > { %291 = vst [vmem:[#allocation2] sm:$0xff] %v891_v0 }
  0x42   : > { %292 = vst [vmem:[#allocation2 + $0x8] sm:$0xff] %v891_v0 }
  0x43 PF: > { %v310_v1 = vld [vmem:[%s1024_s12 + $0x78] sm:$0xff]  ;;  %v309_v3 = vld [vmem:[%s1024_s12 + $0x70] sm:$0xff]  ;;  %v308_v5 = vld [vmem:[%s1024_s12 + $0x68] sm:$0xff]  ;;  %p612_p1 = scmp.ne.s32.totalorder %s869_s15, 1 }
  0x44   : > { %v609_v2 = vld [vmem:[%s1024_s12 + $0xf8] sm:$0xff]  ;;  %311 = vmatpush.xpose.msra.mxu0 %v310_v1  ;;  %618 = vmatpush.xpose.msra.mxu3 %v310_v1  ;;  %v608_v4 = vld [vmem:[%s1024_s12 + $0xf0] sm:$0xff]  ;;  %v607_v6 = vld [vmem:[%s1024_s12 + $0xe8] sm:$0xff] }
  0x45   : > { %351 = vmatpush.xpose.msra.mxu1 %v609_v2  ;;  %v307_v7 = vld [vmem:[%s1024_s12 + $0x60] sm:$0xff]  ;;  %v306_v9 = vld [vmem:[%s1024_s12 + $0x58] sm:$0xff]  ;;  %v305_v11 = vld [vmem:[%s1024_s12 + $0x50] sm:$0xff] }
  0x46   : > { %v606_v8 = vld [vmem:[%s1024_s12 + $0xe0] sm:$0xff]  ;;  %v605_v10 = vld [vmem:[%s1024_s12 + $0xd8] sm:$0xff]  ;;  %v604_v12 = vld [vmem:[%s1024_s12 + $0xd0] sm:$0xff] }
  0x47   : > { %v304_v13 = vld [vmem:[%s1024_s12 + $0x48] sm:$0xff]  ;;  %v303_v15 = vld [vmem:[%s1024_s12 + $0x40] sm:$0xff]  ;;  %v302_v17 = vld [vmem:[%s1024_s12 + $0x38] sm:$0xff] }
  0x48   : > { %312 = vmatpush.xpose.msra.mxu0 %v309_v3  ;;  %619 = vmatpush.xpose.msra.mxu3 %v309_v3  ;;  %v603_v14 = vld [vmem:[%s1024_s12 + $0xc8] sm:$0xff]  ;;  %v602_v16 = vld [vmem:[%s1024_s12 + $0xc0] sm:$0xff]  ;;  %v601_v18 = vld [vmem:[%s1024_s12 + $0xb8] sm:$0xff] }
  0x49   : > { %352 = vmatpush.xpose.msra.mxu1 %v608_v4  ;;  %v301_v19 = vld [vmem:[%s1024_s12 + $0x30] sm:$0xff]  ;;  %v300_v21 = vld [vmem:[%s1024_s12 + $0x28] sm:$0xff]  ;;  %v433_v23 = vld [vmem:[%s1030_s21 + $0x78] sm:$0xff] }
  0x4a   : > { %v600_v20 = vld [vmem:[%s1024_s12 + $0xb0] sm:$0xff]  ;;  %v599_v22 = vld [vmem:[%s1024_s12 + $0xa8] sm:$0xff]  ;;  %v299_v24 = vld [vmem:[%s1024_s12 + $0x20] sm:$0xff]  ;;  %434 = vmatpush.xpose.msra.mxu2 %v433_v23 }
  0x4b   : > { %v598_v25 = vld [vmem:[%s1024_s12 + $0xa0] sm:$0xff]  ;;  %v432_v26 = vld [vmem:[%s1030_s21 + $0x70] sm:$0xff]  ;;  %v298_v27 = vld [vmem:[%s1024_s12 + $0x18] sm:$0xff] }
  0x4c   : > { %313 = vmatpush.xpose.msra.mxu0 %v308_v5  ;;  %620 = vmatpush.xpose.msra.mxu3 %v308_v5  ;;  %v597_v28 = vld [vmem:[%s1024_s12 + $0x98] sm:$0xff]  ;;  %v431_v29 = vld [vmem:[%s1030_s21 + $0x68] sm:$0xff]  ;;  %v297_v30 = vld [vmem:[%s1024_s12 + $0x10] sm:$0xff] }
  0x4d   : > { %353 = vmatpush.xpose.msra.mxu1 %v607_v6  ;;  %v596_v31 = vld [vmem:[%s1024_s12 + $0x90] sm:$0xff]  ;;  %v430_v32 = vld [vmem:[%s1030_s21 + $0x60] sm:$0xff]  ;;  %v296_v33 = vld [vmem:[%s1024_s12 + $0x8] sm:$0xff] }
  0x4e   : > { %435 = vmatpush.xpose.msra.mxu2 %v432_v26  ;;  %v595_v34 = vld [vmem:[%s1024_s12 + $0x88] sm:$0xff]  ;;  %v429_v35 = vld [vmem:[%s1030_s21 + $0x58] sm:$0xff]  ;;  %v295_v36 = vld [vmem:[%s1024_s12] sm:$0xff] }
  0x4f   : > { %v594_v37 = vld [vmem:[%s1024_s12 + $0x80] sm:$0xff]  ;;  %v428_v38 = vld [vmem:[%s1030_s21 + $0x50] sm:$0xff]  ;;  %v294_v40 = vld [vmem:[#allocation3 + $0x8] sm:$0xff] }
  0x50   : > { %314 = vmatpush.xpose.msra.mxu0 %v307_v7  ;;  %621 = vmatpush.xpose.msra.mxu3 %v307_v7  ;;  %v293_v39 = vld [vmem:[#allocation3] sm:$0xff]  ;;  %v427_v41 = vld [vmem:[%s1030_s21 + $0x48] sm:$0xff]  ;;  %v426_v42 = vld [vmem:[%s1030_s21 + $0x40] sm:$0xff] }
  0x51   : > { %354 = vmatpush.xpose.msra.mxu1 %v606_v8  ;;  %v425_v43 = vld [vmem:[%s1030_s21 + $0x38] sm:$0xff]  ;;  %v424_v44 = vld [vmem:[%s1030_s21 + $0x30] sm:$0xff]  ;;  %v423_v45 = vld [vmem:[%s1030_s21 + $0x28] sm:$0xff] }
  0x52   : > { %436 = vmatpush.xpose.msra.mxu2 %v431_v29  ;;  %v422_v46 = vld [vmem:[%s1030_s21 + $0x20] sm:$0xff]  ;;  %v421_v47 = vld [vmem:[%s1030_s21 + $0x18] sm:$0xff]  ;;  %v420_v48 = vld [vmem:[%s1030_s21 + $0x10] sm:$0xff] }
  0x53   : > { %v419_v49 = vld [vmem:[%s1030_s21 + $0x8] sm:$0xff]  ;;  %v418_v50 = vld [vmem:[%s1030_s21] sm:$0xff] }
  0x54   : > { %315 = vmatpush.xpose.msra.mxu0 %v306_v9  ;;  %622 = vmatpush.xpose.msra.mxu3 %v306_v9 }
  0x55   : > { %355 = vmatpush.xpose.msra.mxu1 %v605_v10 }
  0x56   : > { %437 = vmatpush.xpose.msra.mxu2 %v430_v32 }
  0x58   : > { %316 = vmatpush.xpose.msra.mxu0 %v305_v11  ;;  %623 = vmatpush.xpose.msra.mxu3 %v305_v11 }
  0x59   : > { %356 = vmatpush.xpose.msra.mxu1 %v604_v12 }
  0x5a   : > { %438 = vmatpush.xpose.msra.mxu2 %v429_v35 }
  0x5c   : > { %317 = vmatpush.xpose.msra.mxu0 %v304_v13  ;;  %624 = vmatpush.xpose.msra.mxu3 %v304_v13 }
  0x5d   : > { %357 = vmatpush.xpose.msra.mxu1 %v603_v14 }
  0x5e   : > { %439 = vmatpush.xpose.msra.mxu2 %v428_v38 }
  0x60   : > { %318 = vmatpush.xpose.msra.mxu0 %v303_v15  ;;  %625 = vmatpush.xpose.msra.mxu3 %v303_v15 }
  0x61   : > { %358 = vmatpush.xpose.msra.mxu1 %v602_v16 }
  0x62   : > { %440 = vmatpush.xpose.msra.mxu2 %v427_v41 }
  0x64   : > { %319 = vmatpush.xpose.msra.mxu0 %v302_v17  ;;  %626 = vmatpush.xpose.msra.mxu3 %v302_v17 }
  0x65   : > { %359 = vmatpush.xpose.msra.mxu1 %v601_v18 }
  0x66   : > { %441 = vmatpush.xpose.msra.mxu2 %v426_v42 }
  0x68   : > { %320 = vmatpush.xpose.msra.mxu0 %v301_v19  ;;  %627 = vmatpush.xpose.msra.mxu3 %v301_v19 }
  0x69   : > { %360 = vmatpush.xpose.msra.mxu1 %v600_v20 }
  0x6a   : > { %442 = vmatpush.xpose.msra.mxu2 %v425_v43 }
  0x6c   : > { %321 = vmatpush.xpose.msra.mxu0 %v300_v21  ;;  %628 = vmatpush.xpose.msra.mxu3 %v300_v21  ;;  %v416_v21 = vld [vmem:[#allocation2] sm:$0xff] }
  0x6d   : > { %361 = vmatpush.xpose.msra.mxu1 %v599_v22 }
  0x6e   : > { %443 = vmatpush.xpose.msra.mxu2 %v424_v44 }
  0x70   : > { %322 = vmatpush.xpose.msra.mxu0 %v299_v24  ;;  %629 = vmatpush.xpose.msra.mxu3 %v299_v24  ;;  %v417_v24 = vld [vmem:[#allocation2 + $0x8] sm:$0xff] }
  0x71   : > { %362 = vmatpush.xpose.msra.mxu1 %v598_v25 }
  0x72   : > { %444 = vmatpush.xpose.msra.mxu2 %v423_v45 }
  0x74   : > { %323 = vmatpush.xpose.msra.mxu0 %v298_v27  ;;  %630 = vmatpush.xpose.msra.mxu3 %v298_v27 }
  0x75   : > { %363 = vmatpush.xpose.msra.mxu1 %v597_v28 }
  0x76   : > { %445 = vmatpush.xpose.msra.mxu2 %v422_v46 }
  0x78   : > { %324 = vmatpush.xpose.msra.mxu0 %v297_v30  ;;  %631 = vmatpush.xpose.msra.mxu3 %v297_v30 }
  0x79   : > { %364 = vmatpush.xpose.msra.mxu1 %v596_v31 }
  0x7a   : > { %446 = vmatpush.xpose.msra.mxu2 %v421_v47 }
  0x7c   : > { %325 = vmatpush.xpose.msra.mxu0 %v296_v33  ;;  %632 = vmatpush.xpose.msra.mxu3 %v296_v33 }
  0x7d   : > { %365 = vmatpush.xpose.msra.mxu1 %v595_v34 }
  0x7e   : > { %447 = vmatpush.xpose.msra.mxu2 %v420_v48 }
  0x80   : > { %326 = vmatpush.xpose.msra.mxu0 %v295_v36  ;;  %633 = vmatpush.xpose.msra.mxu3 %v295_v36 }
  0x81   : > { %366 = vmatpush.xpose.msra.mxu1 %v594_v37 }
  0x82   : > { %448 = vmatpush.xpose.msra.mxu2 %v419_v49 }
  0x83   : > { %327 = vmatmul.f32.vlgmr.msra.gmra.mxu0 %v293_v39  ;;  %330 = vmatmul.f32.vlgmr.msra.gmra.mxu3 %v294_v40 }
  0x84   : > { %367 = vmatmul.f32.vlgmr.msra.gmra.mxu1 %v293_v39 }
  0x86   : > { %449 = vmatpush.xpose.msra.mxu2 %v418_v50 }
  0x8c   : > { %370 = vmatmul.f32.gmra.mxu1 %v294_v40 }
 0x100   : > { %v328_v51 = vpop.f32.mrf.mxu0 }
 0x101   : > { %v368_v52 = vpop.f32.mrf.mxu1 }
 0x102   : > { %v374_v53 = vmul.f32 %v368_v52, %v328_v51 }
 0x104   : > { %v610_v54 = vmul.f32 -1.442695, %v374_v53 }
 0x106   : > { %725 = vpow2.f32 %v610_v54  ;;  %v331_v55 = vpop.f32.mrf.mxu3 }
 0x109   : > { %v371_v56 = vpop.f32.mrf.mxu1 }
 0x10a   : > { %v375_v57 = vmul.f32 %v371_v56, %v331_v55 }
 0x10c   : > { %v726_v58 = vpop.eup %725  ;;  %v611_v59 = vmul.f32 -1.442695, %v375_v57 }
 0x10d   : > { %v382_v60 = vadd.f32 1.0, %v726_v58 }
 0x10e   : > { %727 = vpow2.f32 %v611_v59 }
 0x10f   : > { %729 = vrcp.f32 %v382_v60  ;;  %v395_v2 = vand.u32 2147483648, %v382_v60  ;;  %v393_v4 = vand.u32 2147483647, %v382_v60  ;;  %vm389_vm1 = vweird.f32 %v382_v60 }
 0x111   : > { %v396_v7 = vor.u32 1.1754944e-38, %v395_v2  ;;  %vm394_vm3 = vcmp.eq.f32.partialorder %v393_v4, 8.507059e+37 }
 0x114   : > { %v728_v61 = vpop.eup %727 }
 0x115   : > { %v730_v62 = vpop.eup %729  ;;  %v383_v63 = vadd.f32 1.0, %v728_v61 }
 0x116   : > { %v385_v0 = vmul.f32 %v730_v62, %v382_v60  ;;  %vm390_vm0 = vweird.f32 %v730_v62 }
 0x117   : > { %731 = vrcp.f32 %v383_v63  ;;  %vm391_vm2 = vmor %vm389_vm1, %vm390_vm0  ;;  %v410_v13 = vand.u32 2147483648, %v383_v63  ;;  %v408_v15 = vand.u32 2147483647, %v383_v63  ;;  %vm404_vm5 = vweird.f32 %v383_v63 }
 0x118   : > { %v386_v1 = vsub.f32 1.0, %v385_v0 }
 0x119   : > { %v411_v17 = vor.u32 1.1754944e-38, %v410_v13  ;;  %vm409_vm7 = vcmp.eq.f32.partialorder %v408_v15, 8.507059e+37 }
 0x11a   : > { %v387_v3 = vmul.f32 %v730_v62, %v386_v1 }
 0x11c   : > { %v388_v5 = vadd.f32 %v730_v62, %v387_v3 }
 0x11d   : > { %v732_v6 = vpop.eup %731 }
 0x11e   : > { %v392_v8 = vsel %vm391_vm2, %v730_v62, %v388_v5  ;;  %v400_v9 = vmul.f32 %v732_v6, %v383_v63  ;;  %vm405_vm4 = vweird.f32 %v732_v6 }
 0x11f   : > { %v397_v10 = vsel %vm394_vm3, %v396_v7, %v392_v8  ;;  %vm406_vm6 = vmor %vm404_vm5, %vm405_vm4 }
 0x120   : > { %v414_v11 = vmul.f32 %v397_v10, %v374_v53  ;;  %v401_v12 = vsub.f32 1.0, %v400_v9 }
 0x122   : > { %450 = vmatmul.f32.vlgmr.msra.gmra.mxu2 %v414_v11  ;;  %v402_v14 = vmul.f32 %v732_v6, %v401_v12 }
 0x124   : > { %v403_v16 = vadd.f32 %v732_v6, %v402_v14 }
 0x126   : > { %v407_v18 = vsel %vm406_vm6, %v732_v6, %v403_v16 }
 0x127   : > { %v412_v19 = vsel %vm409_vm7, %v411_v17, %v407_v18 }
 0x128   : > { %v415_v20 = vmul.f32 %v412_v19, %v375_v57 }
 0x12a   : > { %453 = vmatmul.f32.gmra.mxu2 %v415_v20 }
 0x1a5   : > { %v451_v22 = vpop.f32.mrf.mxu2 }
 0x1a6   : > { %v457_v23 = vadd.f32 %v451_v22, %v416_v21 }
 0x1a8   : > { %459 = vst [vmem:[#allocation2] sm:$0xff] %v457_v23 }
 0x1ac   : > { %464 = sbr.rel (%p612_p1) target bundleno = 441 (0x1b9), region = 52 }
 0x1ad   : > { %v454_v25 = vpop.f32.mrf.mxu2 }
 0x1ae   : > { %v458_v26 = vadd.f32 %v454_v25, %v417_v24 }
 0x1b0   : > { %460 = vst [vmem:[#allocation2 + $0x8] sm:$0xff] %v458_v26 }
 0x1b1   : > { %v465_v27 = vld [vmem:[#allocation2] sm:$0xff] }
 0x1b2   : > { %467 = vst [vmem:[#allocation9] sm:$0xff] %v465_v27 }
 0x1b7   : > { %v466_v28 = vld [vmem:[#allocation2 + $0x8] sm:$0xff] }
 0x1b8   : > { %468 = vst [vmem:[#allocation9 + $0x8] sm:$0xff] %v466_v28 }
 0x1b9 PF: > { %p659_p2 = scmp.eq.s32.totalorder %s944_s18, 1  ;;  %s479_s11 = sshll.u32 %s1107_s3, 4  ;;  %s480_s11 = int_to_ptr.hbm [resolvable:$true] %s479_s11 }
 0x1ba   : > { %s892_s20 = smov [#allocation9]   ;;  %s893_s29 = smov 128  }
 0x1bb   : > { %s477_s26 = sshll.u32 %s892_s20, 4  ;;  %s894_s30 = smov 8   ;;  %s478_s26 = int_to_ptr.vmem [resolvable:$true] %s477_s26 }
 0x1bc   : > { %650 = dma.vmem_to_hbm [thread:$0]  (%p659_p2), %s478_s26, 256, %s480_s11, [#allocation5], %s893_s29, %s893_s29, %s894_s30  }
 0x1bd   : > { %852 = dma.done.wait (%p659_p2), [#allocation5], 256  }
 0x1be   : > { %854 = vsyncadd (%p659_p2), [#allocation5], 4294967040 }
 0x1bf PF: > { %s18_s17 = sadd.s32 1, %s877_s17   ;;  %s1113_s12 = smov %s861_s13 }
 0x1c0   : > { %p15_p3 = scmp.ge.s32.totalorder %s18_s17, 4   ;;  %s1114_s13 = smov %s865_s14 }
 0x1c1   : > { %s1115_s14 = smov %s970_s24  ;;  %s1116_s15 = smov %s873_s16 }
 0x1c2   : > { %s1117_s16 = smov %s1119_s19  ;;  %17 = sbr.rel (!%p15_p3) target bundleno = 8 (0x8), region = 101 }
 0x1c7   :  { %496 = vsyncpa [#allocation4], 1 }
 0x1c8   :  { %498 = vsyncpa [#allocation4 + $0x1], 1 }
 0x1c9   :  { %499 = vsyncpa [#allocation7], 1 }
 0x1ca   :  { %501 = vsyncpa [#allocation7 + $0x1], 1 }
 0x1cb   :  { %502 = vsyncpa [#allocation5], 1 }
 0x1cc   :  { %504 = vsyncpa [#allocation5 + $0x1], 1 }

</bundles_post_ra>
